<compile_context>
chip_gen: v5e
topology: v5e:2x2
jax: 0.10.0
libtpu: 0.0.40
codegen_flags: <defaults>
</compile_context>

<pallas_src>
import functools

import jax
import jax.numpy as jnp
from jax import lax
from jax.experimental import pallas as pl
from jax.experimental.pallas import tpu as pltpu  # noqa: F401  (TPU backend)

HIDDEN = 256
BN_EPS = 1e-5


# ----------------------------------------------------------------------------
# Fused Pallas kernel: 3x (HypergraphConv + ReLU [+ BatchNorm1d])
# ----------------------------------------------------------------------------
def _fused_hgnn_kernel(x_ref, p_ref,
                       w1_ref, b1_ref, g1_ref, be1_ref,
                       w2_ref, b2_ref, g2_ref, be2_ref,
                       w3_ref, b3_ref,
                       o_ref, *, n_nodes: int):
    p = p_ref[...]                      # [N, N] propagation matrix (shared)
    inv_n = 1.0 / float(n_nodes)

    def conv(z, w_ref, b_ref):
        # X Theta  -> then  P (X Theta) + bias      (2 matmuls per layer)
        y = jnp.dot(z, w_ref[...], preferred_element_type=jnp.float32)
        return jnp.dot(p, y, preferred_element_type=jnp.float32) + b_ref[...]

    def batchnorm(z, g_ref, be_ref):
        # One-pass moments over the node axis (biased variance, like PyTorch
        # BatchNorm1d in training mode).
        mean = jnp.sum(z, axis=0, keepdims=True) * inv_n
        msq = jnp.sum(z * z, axis=0, keepdims=True) * inv_n
        var = msq - mean * mean
        return (z - mean) * lax.rsqrt(var + BN_EPS) * g_ref[...] + be_ref[...]

    # layer 1: conv -> ReLU -> BN
    z = jnp.maximum(conv(x_ref[...], w1_ref, b1_ref), 0.0)
    z = batchnorm(z, g1_ref, be1_ref)
    # layer 2: conv -> ReLU -> BN
    z = jnp.maximum(conv(z, w2_ref, b2_ref), 0.0)
    z = batchnorm(z, g2_ref, be2_ref)
    # layer 3: conv -> ReLU (no BN); weights are zero-padded to a 128-multiple
    # output width so this store is lane-dense / unmasked.
    z = jnp.maximum(conv(z, w3_ref, b3_ref), 0.0)
    o_ref[...] = z


def hgnn_encoder(x, p_mat, params, out_channels):
    """Fused HgnnEncoder forward. `p_mat` = D^{-1} H B H^T, precomputed."""
    n = x.shape[0]
    f_out_pad = params[2]["w"].shape[1]
    args = (
        x, p_mat,
        params[0]["w"], params[0]["b"], params[0]["gamma"], params[0]["beta"],
        params[1]["w"], params[1]["b"], params[1]["gamma"], params[1]["beta"],
        params[2]["w"], params[2]["b"],
    )
    # Tiny working set (< 1 MiB) -> full-array blocks, no grid.  For large
    # graphs: tile the node axis with a "parallel" grid dim (v7x megacore) and
    # raise vmem_limit_bytes via pltpu.CompilerParams.
    in_specs = [pl.BlockSpec(a.shape, lambda: (0, 0)) for a in args]
    out = pl.pallas_call(
        functools.partial(_fused_hgnn_kernel, n_nodes=n),
        out_shape=jax.ShapeDtypeStruct((n, f_out_pad), jnp.float32),
        in_specs=in_specs,
        out_specs=pl.BlockSpec((n, f_out_pad), lambda: (0, 0)),
    )(*args)
    return out[:, :out_channels]


# ----------------------------------------------------------------------------
# Plain-JAX glue: propagation matrix, parameter init.
# ----------------------------------------------------------------------------
def build_propagation(edge, num_nodes, num_hyperedges):
    """P = D^{-1} H B H^T from edge index pair [2, E].  Hoist if edge is static."""
    h = jnp.zeros((num_nodes, num_hyperedges), jnp.float32)
    h = h.at[edge[0], edge[1]].set(1.0)
    deg_n = jnp.sum(h, axis=1, keepdims=True)                 # [N, 1]
    deg_e = jnp.sum(h, axis=0, keepdims=True)                 # [1, M]
    dinv = jnp.where(deg_n > 0, 1.0 / deg_n, 0.0)
    binv = jnp.where(deg_e > 0, 1.0 / deg_e, 0.0)
    return dinv * ((h * binv) @ h.T)                          # [N, N]


def _round_up(v, m):
    return ((v + m - 1) // m) * m


def glorot(key, shape):
    fan_in, fan_out = shape
    lim = (6.0 / (fan_in + fan_out)) ** 0.5
    return jax.random.uniform(key, shape, jnp.float32, -lim, lim)


def init_params(key, in_channels, out_channels, hidden=HIDDEN):
    k1, k2, k3 = jax.random.split(key, 3)
    out_pad = max(_round_up(out_channels, 128), 128)

    def layer(k, fi, fo, fo_pad, with_bn):
        w = glorot(k, (fi, fo))
        b = jnp.zeros((1, fo), jnp.float32)
        if fo_pad != fo:                       # zero-pad to lane-dense width
            w = jnp.pad(w, ((0, 0), (0, fo_pad - fo)))
            b = jnp.pad(b, ((0, 0), (0, fo_pad - fo)))
        p = dict(w=w, b=b)
        if with_bn:
            p["gamma"] = jnp.ones((1, fo), jnp.float32)
            p["beta"] = jnp.zeros((1, fo), jnp.float32)
        return p

    return [
        layer(k1, in_channels, hidden, hidden, True),
        layer(k2, hidden, hidden, hidden, True),
        layer(k3, hidden, out_channels, out_pad, False),
    ]


# ----------------------------------------------------------------------------
# Demo
# ----------------------------------------------------------------------------
if __name__ == "__main__":
    IN_CHANNELS = 32
    OUT_CHANNELS = 64
    N_NODES = 32
    N_HYPEREDGES = 16
    NODES_PER_EDGE = 4

    key = jax.random.PRNGKey(0)
    k_x, k_p = jax.random.split(key)

    # Node features [N, in_channels]
    x = jax.random.normal(k_x, (N_NODES, IN_CHANNELS), jnp.float32)

    # Deterministic hyperedge index pair [2, E]: hyperedge j connects 4 nodes.
    e_total = N_HYPEREDGES * NODES_PER_EDGE
    node_idx = (jnp.arange(e_total, dtype=jnp.int32) * 7) % N_NODES
    hedge_idx = jnp.repeat(jnp.arange(N_HYPEREDGES, dtype=jnp.int32),
                           NODES_PER_EDGE)
    edge = jnp.stack([node_idx, hedge_idx], axis=0)

    params = init_params(k_p, IN_CHANNELS, OUT_CHANNELS)

    # Propagation structure is layer-invariant: build once, reuse every forward.
    p_mat = build_propagation(edge, N_NODES, N_HYPEREDGES)

    fwd = jax.jit(functools.partial(hgnn_encoder, out_channels=OUT_CHANNELS))
    out = fwd(x, p_mat, params)
    out = jax.block_until_ready(out)

    assert out.shape == (N_NODES, OUT_CHANNELS), out.shape
    assert out.dtype == jnp.float32
    assert bool(jnp.all(jnp.isfinite(out)))

    print("KERNEL_OK")
</pallas_src>

<mosaic_0001>
module attributes {stable_mosaic.version = 11 : i64} {
  func.func @_fused_hgnn_kernel(%arg0: memref<32x32xf32, #tpu.memory_space<vmem>>, %arg1: memref<32x32xf32, #tpu.memory_space<vmem>>, %arg2: memref<32x256xf32, #tpu.memory_space<vmem>>, %arg3: memref<1x256xf32, #tpu.memory_space<vmem>>, %arg4: memref<1x256xf32, #tpu.memory_space<vmem>>, %arg5: memref<1x256xf32, #tpu.memory_space<vmem>>, %arg6: memref<256x256xf32, #tpu.memory_space<vmem>>, %arg7: memref<1x256xf32, #tpu.memory_space<vmem>>, %arg8: memref<1x256xf32, #tpu.memory_space<vmem>>, %arg9: memref<1x256xf32, #tpu.memory_space<vmem>>, %arg10: memref<256x128xf32, #tpu.memory_space<vmem>>, %arg11: memref<1x128xf32, #tpu.memory_space<vmem>>, %arg12: memref<32x128xf32, #tpu.memory_space<vmem>>) attributes {dimension_semantics = [], scalar_prefetch = 0 : i64, scratch_operands = 0 : i64, tpu.core_type = #tpu.core_type<tc>} {
    %c0 = arith.constant 0 : index
    %c0_0 = arith.constant 0 : index
    %0 = vector.load %arg1[%c0, %c0_0] : memref<32x32xf32, #tpu.memory_space<vmem>>, vector<32x32xf32>
    %c0_1 = arith.constant 0 : index
    %c0_2 = arith.constant 0 : index
    %1 = vector.load %arg0[%c0_1, %c0_2] : memref<32x32xf32, #tpu.memory_space<vmem>>, vector<32x32xf32>
    %c0_3 = arith.constant 0 : index
    %c0_4 = arith.constant 0 : index
    %2 = vector.load %arg2[%c0_3, %c0_4] : memref<32x256xf32, #tpu.memory_space<vmem>>, vector<32x256xf32>
    %cst = arith.constant dense<0.000000e+00> : vector<32x256xf32>
    %3 = tpu.matmul %1, %2, %cst {dimension_numbers = #tpu.dot_dimension_numbers<[1], [0], [0], [1], [0, 0, 1, 1], [], []>} : vector<32x32xf32>, vector<32x256xf32>, vector<32x256xf32> -> vector<32x256xf32>
    %cst_5 = arith.constant dense<0.000000e+00> : vector<32x256xf32>
    %4 = tpu.matmul %0, %3, %cst_5 {dimension_numbers = #tpu.dot_dimension_numbers<[1], [0], [0], [1], [0, 0, 1, 1], [], []>} : vector<32x32xf32>, vector<32x256xf32>, vector<32x256xf32> -> vector<32x256xf32>
    %c0_6 = arith.constant 0 : index
    %c0_7 = arith.constant 0 : index
    %5 = vector.load %arg3[%c0_6, %c0_7] : memref<1x256xf32, #tpu.memory_space<vmem>>, vector<1x256xf32>
    %6 = vector.broadcast %5 : vector<1x256xf32> to vector<32x256xf32>
    %7 = arith.addf %4, %6 : vector<32x256xf32>
    %cst_8 = arith.constant 0.000000e+00 : f32
    %8 = vector.broadcast %cst_8 : f32 to vector<32x256xf32>
    %9 = arith.maximumf %7, %8 : vector<32x256xf32>
    %cst_9 = arith.constant dense<0.000000e+00> : vector<256xf32>
    %10 = vector.multi_reduction <add>, %9, %cst_9 [0] : vector<32x256xf32> to vector<256xf32>
    %11 = vector.shape_cast %10 : vector<256xf32> to vector<1x256xf32>
    %cst_10 = arith.constant 3.125000e-02 : f32
    %12 = vector.broadcast %cst_10 : f32 to vector<1x256xf32>
    %13 = arith.mulf %11, %12 : vector<1x256xf32>
    %14 = arith.mulf %9, %9 : vector<32x256xf32>
    %cst_11 = arith.constant dense<0.000000e+00> : vector<256xf32>
    %15 = vector.multi_reduction <add>, %14, %cst_11 [0] : vector<32x256xf32> to vector<256xf32>
    %16 = vector.shape_cast %15 : vector<256xf32> to vector<1x256xf32>
    %cst_12 = arith.constant 3.125000e-02 : f32
    %17 = vector.broadcast %cst_12 : f32 to vector<1x256xf32>
    %18 = arith.mulf %16, %17 : vector<1x256xf32>
    %19 = arith.mulf %13, %13 : vector<1x256xf32>
    %20 = arith.subf %18, %19 : vector<1x256xf32>
    %21 = vector.broadcast %13 : vector<1x256xf32> to vector<32x256xf32>
    %22 = arith.subf %9, %21 : vector<32x256xf32>
    %cst_13 = arith.constant 9.99999974E-6 : f32
    %23 = vector.broadcast %cst_13 : f32 to vector<1x256xf32>
    %24 = arith.addf %20, %23 : vector<1x256xf32>
    %25 = math.rsqrt %24 : vector<1x256xf32>
    %26 = vector.broadcast %25 : vector<1x256xf32> to vector<32x256xf32>
    %27 = arith.mulf %22, %26 : vector<32x256xf32>
    %c0_14 = arith.constant 0 : index
    %c0_15 = arith.constant 0 : index
    %28 = vector.load %arg4[%c0_14, %c0_15] : memref<1x256xf32, #tpu.memory_space<vmem>>, vector<1x256xf32>
    %29 = vector.broadcast %28 : vector<1x256xf32> to vector<32x256xf32>
    %30 = arith.mulf %27, %29 : vector<32x256xf32>
    %c0_16 = arith.constant 0 : index
    %c0_17 = arith.constant 0 : index
    %31 = vector.load %arg5[%c0_16, %c0_17] : memref<1x256xf32, #tpu.memory_space<vmem>>, vector<1x256xf32>
    %32 = vector.broadcast %31 : vector<1x256xf32> to vector<32x256xf32>
    %33 = arith.addf %30, %32 : vector<32x256xf32>
    %c0_18 = arith.constant 0 : index
    %c0_19 = arith.constant 0 : index
    %34 = vector.load %arg6[%c0_18, %c0_19] : memref<256x256xf32, #tpu.memory_space<vmem>>, vector<256x256xf32>
    %cst_20 = arith.constant dense<0.000000e+00> : vector<32x256xf32>
    %35 = tpu.matmul %33, %34, %cst_20 {dimension_numbers = #tpu.dot_dimension_numbers<[1], [0], [0], [1], [0, 0, 1, 1], [], []>} : vector<32x256xf32>, vector<256x256xf32>, vector<32x256xf32> -> vector<32x256xf32>
    %cst_21 = arith.constant dense<0.000000e+00> : vector<32x256xf32>
    %36 = tpu.matmul %0, %35, %cst_21 {dimension_numbers = #tpu.dot_dimension_numbers<[1], [0], [0], [1], [0, 0, 1, 1], [], []>} : vector<32x32xf32>, vector<32x256xf32>, vector<32x256xf32> -> vector<32x256xf32>
    %c0_22 = arith.constant 0 : index
    %c0_23 = arith.constant 0 : index
    %37 = vector.load %arg7[%c0_22, %c0_23] : memref<1x256xf32, #tpu.memory_space<vmem>>, vector<1x256xf32>
    %38 = vector.broadcast %37 : vector<1x256xf32> to vector<32x256xf32>
    %39 = arith.addf %36, %38 : vector<32x256xf32>
    %cst_24 = arith.constant 0.000000e+00 : f32
    %40 = vector.broadcast %cst_24 : f32 to vector<32x256xf32>
    %41 = arith.maximumf %39, %40 : vector<32x256xf32>
    %cst_25 = arith.constant dense<0.000000e+00> : vector<256xf32>
    %42 = vector.multi_reduction <add>, %41, %cst_25 [0] : vector<32x256xf32> to vector<256xf32>
    %43 = vector.shape_cast %42 : vector<256xf32> to vector<1x256xf32>
    %cst_26 = arith.constant 3.125000e-02 : f32
    %44 = vector.broadcast %cst_26 : f32 to vector<1x256xf32>
    %45 = arith.mulf %43, %44 : vector<1x256xf32>
    %46 = arith.mulf %41, %41 : vector<32x256xf32>
    %cst_27 = arith.constant dense<0.000000e+00> : vector<256xf32>
    %47 = vector.multi_reduction <add>, %46, %cst_27 [0] : vector<32x256xf32> to vector<256xf32>
    %48 = vector.shape_cast %47 : vector<256xf32> to vector<1x256xf32>
    %cst_28 = arith.constant 3.125000e-02 : f32
    %49 = vector.broadcast %cst_28 : f32 to vector<1x256xf32>
    %50 = arith.mulf %48, %49 : vector<1x256xf32>
    %51 = arith.mulf %45, %45 : vector<1x256xf32>
    %52 = arith.subf %50, %51 : vector<1x256xf32>
    %53 = vector.broadcast %45 : vector<1x256xf32> to vector<32x256xf32>
    %54 = arith.subf %41, %53 : vector<32x256xf32>
    %cst_29 = arith.constant 9.99999974E-6 : f32
    %55 = vector.broadcast %cst_29 : f32 to vector<1x256xf32>
    %56 = arith.addf %52, %55 : vector<1x256xf32>
    %57 = math.rsqrt %56 : vector<1x256xf32>
    %58 = vector.broadcast %57 : vector<1x256xf32> to vector<32x256xf32>
    %59 = arith.mulf %54, %58 : vector<32x256xf32>
    %c0_30 = arith.constant 0 : index
    %c0_31 = arith.constant 0 : index
    %60 = vector.load %arg8[%c0_30, %c0_31] : memref<1x256xf32, #tpu.memory_space<vmem>>, vector<1x256xf32>
    %61 = vector.broadcast %60 : vector<1x256xf32> to vector<32x256xf32>
    %62 = arith.mulf %59, %61 : vector<32x256xf32>
    %c0_32 = arith.constant 0 : index
    %c0_33 = arith.constant 0 : index
    %63 = vector.load %arg9[%c0_32, %c0_33] : memref<1x256xf32, #tpu.memory_space<vmem>>, vector<1x256xf32>
    %64 = vector.broadcast %63 : vector<1x256xf32> to vector<32x256xf32>
    %65 = arith.addf %62, %64 : vector<32x256xf32>
    %c0_34 = arith.constant 0 : index
    %c0_35 = arith.constant 0 : index
    %66 = vector.load %arg10[%c0_34, %c0_35] : memref<256x128xf32, #tpu.memory_space<vmem>>, vector<256x128xf32>
    %cst_36 = arith.constant dense<0.000000e+00> : vector<32x128xf32>
    %67 = tpu.matmul %65, %66, %cst_36 {dimension_numbers = #tpu.dot_dimension_numbers<[1], [0], [0], [1], [0, 0, 1, 1], [], []>} : vector<32x256xf32>, vector<256x128xf32>, vector<32x128xf32> -> vector<32x128xf32>
    %cst_37 = arith.constant dense<0.000000e+00> : vector<32x128xf32>
    %68 = tpu.matmul %0, %67, %cst_37 {dimension_numbers = #tpu.dot_dimension_numbers<[1], [0], [0], [1], [0, 0, 1, 1], [], []>} : vector<32x32xf32>, vector<32x128xf32>, vector<32x128xf32> -> vector<32x128xf32>
    %c0_38 = arith.constant 0 : index
    %c0_39 = arith.constant 0 : index
    %69 = vector.load %arg11[%c0_38, %c0_39] : memref<1x128xf32, #tpu.memory_space<vmem>>, vector<1x128xf32>
    %70 = vector.broadcast %69 : vector<1x128xf32> to vector<32x128xf32>
    %71 = arith.addf %68, %70 : vector<32x128xf32>
    %cst_40 = arith.constant 0.000000e+00 : f32
    %72 = vector.broadcast %cst_40 : f32 to vector<32x128xf32>
    %73 = arith.maximumf %71, %72 : vector<32x128xf32>
    %c0_41 = arith.constant 0 : index
    %c0_42 = arith.constant 0 : index
    %74 = vector.load %arg12[%c0_41, %c0_42] : memref<32x128xf32, #tpu.memory_space<vmem>>, vector<32x128xf32>
    tpu.vector_store %arg12[%c0_41, %c0_42], %73 {strides = array<i32>} : memref<32x128xf32, #tpu.memory_space<vmem>>, vector<32x128xf32>,
    return
  }
}

</mosaic_0001>

<bundles_post_ra>
// kernel: hgnn_encoder.1
= control target key start
LH: loop header
LB: loop body
LE: loop exit
PB: predicated region body
PF: predicated region fallthrough
CT: control target
= control target key end

     0   :  { %17 = vsyncpa [#allocation3], 0  ;;  %s1585_s0 = inlined_call_operand.hbm [shape: f32[32,32], index: 0, kind: input, shape index: {}]   ;;  %s1586_s1 = inlined_call_operand.hbm [shape: f32[32,32], index: 1, kind: input, shape index: {}]   ;;  %s1587_s2 = inlined_call_operand.hbm [shape: f32[32,256], index: 2, kind: input, shape index: {}]   ;;  %s1588_s3 = inlined_call_operand.hbm [shape: f32[1,256], index: 3, kind: input, shape index: {}]   ;;  %s1589_s4 = inlined_call_operand.vmem [shape: f32[1,256], index: 4, kind: input, shape index: {}]   ;;  %s1590_s5 = inlined_call_operand.hbm [shape: f32[1,256], index: 5, kind: input, shape index: {}]   ;;  %s1591_s6 = inlined_call_operand.hbm [shape: f32[256,256], index: 6, kind: input, shape index: {}]   ;;  %s1592_s7 = inlined_call_operand.vmem [shape: f32[1,256], index: 7, kind: input, shape index: {}]   ;;  %s1593_s8 = inlined_call_operand.vmem [shape: f32[1,256], index: 8, kind: input, shape index: {}]   ;;  %s1594_s9 = inlined_call_operand.hbm [shape: f32[1,256], index: 9, kind: input, shape index: {}]   ;;  %s1595_s10 = inlined_call_operand.hbm [shape: f32[256,128], index: 10, kind: input, shape index: {}]   ;;  %s1596_s11 = inlined_call_operand.vmem [shape: f32[1,128], index: 11, kind: input, shape index: {}]   ;;  %s1597_s12 = inlined_call_operand.hbm [shape: f32[32,128], index: 12, kind: output, shape index: {}]  }
   0x1   :  { %18 = vsyncpa [#allocation6], 0 }
   0x2   :  { %19 = vsyncpa [#allocation9], 0 }
   0x3   :  { %20 = vsyncpa [#allocation12], 0 }
   0x4   :  { %21 = vsyncpa [#allocation15], 0 }
   0x5   :  { %22 = vsyncpa [#allocation4], 0  ;;  %s40_s23 = sshll.u32 %s1586_s1, 4  ;;  %s1260_s24 = smov [#allocation5]   ;;  %s41_s23 = int_to_ptr.hbm [resolvable:$true] %s40_s23 }
   0x6   :  { %s42_s25 = sshll.u32 %s1260_s24, 4  ;;  %s67_s28 = sshll.u32 %s1588_s3, 4  ;;  %s43_s25 = int_to_ptr.vmem [resolvable:$true] %s42_s25  ;;  %s68_s28 = int_to_ptr.hbm [resolvable:$true] %s67_s28 }
   0x7   :  { %s1261_s29 = smov 128   ;;  %s1262_s30 = smov 8  }
   0x8   :  { %48 = dma.hbm_to_vmem [thread:$0]  %s41_s23, 512, %s43_s25, [#allocation6], %s1261_s29, %s1261_s29, %s1262_s30  }
   0x9   :  { %s1263_s13 = smov [#allocation8]   ;;  %s90_s16 = sshll.u32 %s1591_s6, 4  ;;  %s91_s16 = int_to_ptr.hbm [resolvable:$true] %s90_s16 }
   0xa   :  { %s69_s14 = sshll.u32 %s1263_s13, 4  ;;  %s1264_s17 = smov [#allocation11]   ;;  %s70_s14 = int_to_ptr.vmem [resolvable:$true] %s69_s14 }
   0xb   :  { %72 = dma.hbm_to_vmem [thread:$0]  %s68_s28, 32, %s70_s14, [#allocation9]  }
   0xc   :  { %s92_s18 = sshll.u32 %s1264_s17, 4  ;;  %s27_s20 = sshll.u32 %s1585_s0, 4  ;;  %s93_s18 = int_to_ptr.vmem [resolvable:$true] %s92_s18  ;;  %s28_s20 = int_to_ptr.hbm [resolvable:$true] %s27_s20 }
   0xd   :  { %s1265_s21 = smov 256   ;;  %s1266_s22 = smov 16  }
   0xe   :  { %98 = dma.hbm_to_vmem [thread:$0]  %s91_s16, 8192, %s93_s18, [#allocation12], %s1265_s21, %s1265_s21, %s1266_s22  }
   0xf   :  { %s1267_s23 = smov [#allocation2]   ;;  %s53_s27 = sshll.u32 %s1587_s2, 4  ;;  %s54_s27 = int_to_ptr.hbm [resolvable:$true] %s53_s27 }
  0x10   :  { %s29_s24 = sshll.u32 %s1267_s23, 4  ;;  %s80_s0 = sshll.u32 %s1590_s5, 4  ;;  %s30_s24 = int_to_ptr.vmem [resolvable:$true] %s29_s24  ;;  %s81_s0 = int_to_ptr.hbm [resolvable:$true] %s80_s0 }
  0x11   :  { %35 = dma.hbm_to_vmem [thread:$0]  %s28_s20, 512, %s30_s24, [#allocation3], %s1261_s29, %s1261_s29, %s1262_s30  }
  0x12   :  { %s1268_s13 = smov [#allocation7]   ;;  %s1269_s1 = smov [#allocation10]  }
  0x13   :  { %s55_s14 = sshll.u32 %s1268_s13, 4  ;;  %s82_s15 = sshll.u32 %s1269_s1, 4  ;;  %s56_s14 = int_to_ptr.vmem [resolvable:$true] %s55_s14  ;;  %s83_s15 = int_to_ptr.vmem [resolvable:$true] %s82_s15 }
  0x14   :  { %61 = dma.hbm_to_vmem [thread:$0]  %s54_s27, 1024, %s56_s14, [#allocation6], %s1265_s21, %s1265_s21, %s1266_s22  }
  0x15   :  { %s108_s2 = sshll.u32 %s1594_s9, 4  ;;  %s118_s19 = sshll.u32 %s1595_s10, 4  ;;  %s109_s2 = int_to_ptr.hbm [resolvable:$true] %s108_s2  ;;  %s119_s19 = int_to_ptr.hbm [resolvable:$true] %s118_s19 }
  0x16   :  { %85 = dma.hbm_to_vmem [thread:$0]  %s81_s0, 32, %s83_s15, [#allocation9]  }
  0x17   :  { %s1270_s20 = smov [#allocation13]   ;;  %s1271_s23 = smov [#allocation14]  }
  0x18   :  { %s110_s5 = sshll.u32 %s1270_s20, 4  ;;  %s120_s21 = sshll.u32 %s1271_s23, 4  ;;  %s111_s5 = int_to_ptr.vmem [resolvable:$true] %s110_s5  ;;  %s121_s21 = int_to_ptr.vmem [resolvable:$true] %s120_s21 }
  0x19   :  { %113 = dma.hbm_to_vmem [thread:$0]  %s109_s2, 32, %s111_s5, [#allocation12]  }
  0x1a   :  { %126 = dma.hbm_to_vmem [thread:$0]  %s119_s19, 4096, %s121_s21, [#allocation15], %s1261_s29, %s1261_s29, %s1262_s30  }
  0x1b   :  { %1248 = dma.done.wait [#allocation3], 512  }
  0x1c   :  { %1249 = vsyncadd [#allocation3], 4294966784 }
  0x1d   :  { %1250 = dma.done.wait [#allocation6], 1536  }
  0x1e   :  { %1251 = vsyncadd [#allocation6], 4294965760 }
  0x1f   :  { %1252 = dma.done.wait [#allocation9], 64  }
  0x20   :  { %1253 = vsyncadd [#allocation9], 4294967232 }
  0x21   :  { %1254 = dma.done.wait [#allocation12], 8224  }
  0x22   :  { %1255 = vsyncadd [#allocation12], 4294959072 }
  0x23   :  { %1256 = dma.done.wait [#allocation15], 4096  }
  0x24   :  { %1257 = vsyncadd [#allocation15], 4294963200  ;;  %v175_v0 = vld [vmem:[#allocation7 + $0x30] sm:$0xff]  ;;  %v176_v1 = vld [vmem:[#allocation7 + $0x38] sm:$0xff]  ;;  %vm177_vm0 = vcmask 261120   ;;  %s1272_s26 = smov [#allocation16]  }
  0x25   :  { %v173_v2 = vld [vmem:[#allocation7 + $0x20] sm:$0xff]  ;;  %202 = vmatpush.msra.mxu0 %v175_v0  ;;  %231 = vmatpush.msra.mxu1 %v176_v1  ;;  %v174_v3 = vld [vmem:[#allocation7 + $0x28] sm:$0xff]  ;;  %v171_v4 = vld [vmem:[#allocation7 + $0x10] sm:$0xff]  ;;  %s955_s27 = sshll.u32 %s1272_s26, 4  ;;  %s957_s0 = sshll.u32 %s1597_s12, 4  ;;  %s956_s27 = int_to_ptr.vmem [resolvable:$true] %s955_s27  ;;  %s958_s0 = int_to_ptr.hbm [resolvable:$true] %s957_s0 }
  0x26   :  { %v172_v5 = vld [vmem:[#allocation7 + $0x18] sm:$0xff]  ;;  %v169_v6 = vld [vmem:[#allocation7] sm:$0xff]  ;;  %v170_v7 = vld [vmem:[#allocation7 + $0x8] sm:$0xff] }
  0x27   :  { %203 = vmatpush.msra.mxu0 %v173_v2  ;;  %232 = vmatpush.msra.mxu1 %v174_v3  ;;  %v165_v8 = vld [vmem:[#allocation2] sm:$0xff]  ;;  %v166_v9 = vld [vmem:[#allocation2 + $0x8] sm:$0xff]  ;;  %v167_v10 = vld [vmem:[#allocation2 + $0x10] sm:$0xff] }
  0x28   :  { %v168_v11 = vld [vmem:[#allocation2 + $0x18] sm:$0xff]  ;;  %v1379_v20 = vld [vmem:[#allocation5] sm:$0xff]  ;;  %v1385_v21 = vld [vmem:[#allocation5 + $0x8] sm:$0xff] }
  0x29   :  { %204 = vmatpush.msra.mxu0 %v171_v4  ;;  %233 = vmatpush.msra.mxu1 %v172_v5  ;;  %v1391_v22 = vld [vmem:[#allocation5 + $0x10] sm:$0xff]  ;;  %v1397_v23 = vld [vmem:[#allocation5 + $0x18] sm:$0xff]  ;;  %v248_v26 = vld [vmem:[#allocation8] sm:$0x3] }
  0x2a   :  { %v1403_v29 = vperm.slane %v248_v26, 0  ;;  %v1405_v30 = vperm.slane %v248_v26, 1  ;;  %v480_v31 = vld [vmem:[#allocation11 + $0xf0] sm:$0xff]  ;;  %v481_v33 = vld [vmem:[#allocation11 + $0xf8] sm:$0xff]  ;;  %v478_v37 = vld [vmem:[#allocation11 + $0xe0] sm:$0xff] }
  0x2b   :  { %205 = vmatpush.msra.mxu0 %v169_v6  ;;  %234 = vmatpush.msra.mxu1 %v170_v7  ;;  %v512_v32 = vld [vmem:[#allocation11 + $0x1f0] sm:$0xff]  ;;  %v513_v34 = vld [vmem:[#allocation11 + $0x1f8] sm:$0xff]  ;;  %v510_v38 = vld [vmem:[#allocation11 + $0x1e0] sm:$0xff] }
  0x2c   :  { %974 = vmatmul.msk.f32.vlgmr.msra.gmra.mxu0 %vm177_vm0, %v165_v8  ;;  %978 = vmatmul.msk.f32.vlgmr.msra.gmra.mxu1 %vm177_vm0, %v165_v8  ;;  %v479_v39 = vld [vmem:[#allocation11 + $0xe8] sm:$0xff]  ;;  %v476_v45 = vld [vmem:[#allocation11 + $0xd0] sm:$0xff]  ;;  %v477_v47 = vld [vmem:[#allocation11 + $0xd8] sm:$0xff] }
  0x2d   :  { %514 = vmatpush.msrb.mxu0 %v480_v31  ;;  %543 = vmatpush.msrb.mxu1 %v512_v32  ;;  %v511_v42 = vld [vmem:[#allocation11 + $0x1e8] sm:$0xff]  ;;  %v508_v46 = vld [vmem:[#allocation11 + $0x1d0] sm:$0xff]  ;;  %v509_v50 = vld [vmem:[#allocation11 + $0x1d8] sm:$0xff] }
  0x2e   :  { %v474_v53 = vld [vmem:[#allocation11 + $0xc0] sm:$0xff]  ;;  %v475_v55 = vld [vmem:[#allocation11 + $0xc8] sm:$0xff]  ;;  %v472_v61 = vld [vmem:[#allocation11 + $0xb0] sm:$0xff] }
  0x2f   :  { %515 = vmatpush.msrb.mxu0 %v478_v37  ;;  %544 = vmatpush.msrb.mxu1 %v510_v38  ;;  %v506_v54 = vld [vmem:[#allocation11 + $0x1c0] sm:$0xff]  ;;  %v507_v58 = vld [vmem:[#allocation11 + $0x1c8] sm:$0xff]  ;;  %v504_v62 = vld [vmem:[#allocation11 + $0x1b0] sm:$0xff] }
  0x30   :  { %v473_v63 = vld [vmem:[#allocation11 + $0xb8] sm:$0xff]  ;;  %v470_v3 = vld [vmem:[#allocation11 + $0xa0] sm:$0xff]  ;;  %v471_v5 = vld [vmem:[#allocation11 + $0xa8] sm:$0xff] }
  0x31   :  { %516 = vmatpush.msrb.mxu0 %v476_v45  ;;  %545 = vmatpush.msrb.mxu1 %v508_v46  ;;  %v505_v0 = vld [vmem:[#allocation11 + $0x1b8] sm:$0xff]  ;;  %v502_v4 = vld [vmem:[#allocation11 + $0x1a0] sm:$0xff]  ;;  %v503_v8 = vld [vmem:[#allocation11 + $0x1a8] sm:$0xff] }
  0x32   :  { %v467_v31 = vld [vmem:[#allocation11 + $0x88] sm:$0xff]  ;;  %v496_v38 = vld [vmem:[#allocation11 + $0x170] sm:$0xff]  ;;  %v462_v45 = vld [vmem:[#allocation11 + $0x60] sm:$0xff] }
  0x33   :  { %517 = vmatpush.msrb.mxu0 %v474_v53  ;;  %546 = vmatpush.msrb.mxu1 %v506_v54  ;;  %v494_v46 = vld [vmem:[#allocation11 + $0x160] sm:$0xff]  ;;  %v495_v54 = vld [vmem:[#allocation11 + $0x168] sm:$0xff] }
  0x34   :  { %975 = vmatmul.msk.f32.gmra.mxu0 %vm177_vm0, %v166_v9  ;;  %979 = vmatmul.msk.f32.gmra.mxu1 %vm177_vm0, %v166_v9 }
  0x35   :  { %518 = vmatpush.msrb.mxu0 %v472_v61  ;;  %547 = vmatpush.msrb.mxu1 %v504_v62  ;;  %v461_v61 = vld [vmem:[#allocation11 + $0x58] sm:$0xff] }
  0x37   :  { %519 = vmatpush.msrb.mxu0 %v470_v3  ;;  %548 = vmatpush.msrb.mxu1 %v502_v4  ;;  %v458_v3 = vld [vmem:[#allocation11 + $0x40] sm:$0xff] }
  0x38   :  { %v490_v4 = vld [vmem:[#allocation11 + $0x140] sm:$0xff] }
  0x3c   :  { %976 = vmatmul.msk.f32.gmra.mxu0 %vm177_vm0, %v167_v10  ;;  %980 = vmatmul.msk.f32.gmra.mxu1 %vm177_vm0, %v167_v10 }
  0x44   :  { %977 = vmatmul.msk.f32.gmra.mxu0 %vm177_vm0, %v168_v11  ;;  %981 = vmatmul.msk.f32.gmra.mxu1 %vm177_vm0, %v168_v11 }
  0xa9   :  { %v207_v12 = vpop.f32.mrf.mxu0  ;;  %v236_v13 = vpop.f32.mrf.mxu1 }
  0xb1   :  { %v210_v14 = vpop.f32.mrf.mxu0  ;;  %v239_v15 = vpop.f32.mrf.mxu1 }
  0xb9   :  { %v213_v16 = vpop.f32.mrf.mxu0  ;;  %v242_v17 = vpop.f32.mrf.mxu1 }
  0xc1   :  { %v216_v18 = vpop.f32.mrf.mxu0  ;;  %v245_v19 = vpop.f32.mrf.mxu1 }
  0xc2   :  { %278 = vmatpush.msra.mxu2 %v216_v18  ;;  %307 = vmatpush.msra.mxu3 %v245_v19 }
  0xc4   :  { %279 = vmatpush.msra.mxu2 %v213_v16  ;;  %308 = vmatpush.msra.mxu3 %v242_v17  ;;  %v469_v16 = vld [vmem:[#allocation11 + $0x98] sm:$0xff] }
  0xc6   :  { %280 = vmatpush.msra.mxu2 %v210_v14  ;;  %309 = vmatpush.msra.mxu3 %v239_v15  ;;  %v468_v14 = vld [vmem:[#allocation11 + $0x90] sm:$0xff] }
  0xc7   :  { %v500_v15 = vld [vmem:[#allocation11 + $0x190] sm:$0xff]  ;;  %520 = vmatpush.msrb.mxu0 %v468_v14 }
  0xc8   :  { %281 = vmatpush.msra.mxu2 %v207_v12  ;;  %310 = vmatpush.msra.mxu3 %v236_v13 }
  0xc9   :  { %982 = vmatmul.msk.f32.vlgmr.msra.gmra.mxu2 %vm177_vm0, %v1379_v20  ;;  %986 = vmatmul.msk.f32.vlgmr.msra.gmra.mxu3 %vm177_vm0, %v1379_v20 }
  0xca   :  { %572 = vmatpush.msrb.mxu2 %v481_v33  ;;  %601 = vmatpush.msrb.mxu3 %v513_v34 }
  0xcb   :  { %549 = vmatpush.msrb.mxu1 %v500_v15 }
  0xcc   :  { %573 = vmatpush.msrb.mxu2 %v479_v39  ;;  %602 = vmatpush.msrb.mxu3 %v511_v42  ;;  %v465_v39 = vld [vmem:[#allocation11 + $0x78] sm:$0xff] }
  0xce   :  { %574 = vmatpush.msrb.mxu2 %v477_v47  ;;  %603 = vmatpush.msrb.mxu3 %v509_v50  ;;  %v463_v47 = vld [vmem:[#allocation11 + $0x68] sm:$0xff] }
  0xd0   :  { %575 = vmatpush.msrb.mxu2 %v475_v55  ;;  %604 = vmatpush.msrb.mxu3 %v507_v58  ;;  %v460_v55 = vld [vmem:[#allocation11 + $0x50] sm:$0xff] }
  0xd1   :  { %983 = vmatmul.msk.f32.gmra.mxu2 %vm177_vm0, %v1385_v21  ;;  %987 = vmatmul.msk.f32.gmra.mxu3 %vm177_vm0, %v1385_v21  ;;  %v492_v58 = vld [vmem:[#allocation11 + $0x150] sm:$0xff] }
  0xd2   :  { %576 = vmatpush.msrb.mxu2 %v473_v63  ;;  %605 = vmatpush.msrb.mxu3 %v505_v0 }
  0xd4   :  { %577 = vmatpush.msrb.mxu2 %v471_v5  ;;  %606 = vmatpush.msrb.mxu3 %v503_v8  ;;  %v459_v5 = vld [vmem:[#allocation11 + $0x48] sm:$0xff] }
  0xd6   :  { %578 = vmatpush.msrb.mxu2 %v469_v16 }
  0xd8   :  { %579 = vmatpush.msrb.mxu2 %v467_v31 }
  0xd9   :  { %984 = vmatmul.msk.f32.gmra.mxu2 %vm177_vm0, %v1391_v22  ;;  %988 = vmatmul.msk.f32.gmra.mxu3 %vm177_vm0, %v1391_v22 }
  0xda   :  { %580 = vmatpush.msrb.mxu2 %v465_v39 }
  0xdc   :  { %581 = vmatpush.msrb.mxu2 %v463_v47 }
  0xde   :  { %582 = vmatpush.msrb.mxu2 %v461_v61 }
  0xe0   :  { %583 = vmatpush.msrb.mxu2 %v459_v5 }
  0xe1   :  { %985 = vmatmul.msk.f32.gmra.mxu2 %vm177_vm0, %v1397_v23  ;;  %989 = vmatmul.msk.f32.gmra.mxu3 %vm177_vm0, %v1397_v23 }
 0x14c   :  { %v283_v24 = vpop.f32.mrf.mxu2  ;;  %v312_v25 = vpop.f32.mrf.mxu3 }
 0x14d   :  { %v284_v40 = vadd.f32 %v283_v24, %v1403_v29  ;;  %v313_v41 = vadd.f32 %v312_v25, %v1405_v30  ;;  %v501_v24 = vld [vmem:[#allocation11 + $0x198] sm:$0xff] }
 0x14e   :  { %607 = vmatpush.msrb.mxu3 %v501_v24  ;;  %v486_v24 = vld [vmem:[#allocation11 + $0x120] sm:$0xff] }
 0x14f   :  { %v1417_v56 = vmax.f32 %v284_v40, 0.0  ;;  %v1419_v57 = vmax.f32 %v313_v41, 0.0 }
 0x151   :  { %v352_v6 = vmul.f32 %v1417_v56, %v1417_v56  ;;  %v353_v7 = vmul.f32 %v1419_v57, %v1419_v57 }
 0x154   :  { %v286_v27 = vpop.f32.mrf.mxu2  ;;  %v315_v28 = vpop.f32.mrf.mxu3 }
 0x155   :  { %v287_v35 = vadd.f32 %v286_v27, %v1403_v29  ;;  %v316_v36 = vadd.f32 %v315_v28, %v1405_v30  ;;  %v466_v27 = vld [vmem:[#allocation11 + $0x80] sm:$0xff] }
 0x156   :  { %v498_v28 = vld [vmem:[#allocation11 + $0x180] sm:$0xff]  ;;  %521 = vmatpush.msrb.mxu0 %v466_v27 }
 0x157   :  { %v1413_v51 = vmax.f32 %v287_v35, 0.0  ;;  %v1415_v52 = vmax.f32 %v316_v36, 0.0  ;;  %550 = vmatpush.msrb.mxu1 %v498_v28 }
 0x159   :  { %v354_v1 = vmul.f32 %v1413_v51, %v1413_v51  ;;  %v355_v2 = vmul.f32 %v1415_v52, %v1415_v52  ;;  %v332_v9 = vadd.f32 %v1413_v51, %v1417_v56  ;;  %v341_v17 = vadd.f32 %v1415_v52, %v1419_v57  ;;  %551 = vmatpush.msrb.mxu1 %v496_v38 }
 0x15b   :  { %v360_v25 = vadd.f32 %v354_v1, %v352_v6  ;;  %v369_v26 = vadd.f32 %v355_v2, %v353_v7  ;;  %552 = vmatpush.msrb.mxu1 %v494_v46  ;;  %v493_v2 = vld [vmem:[#allocation11 + $0x158] sm:$0xff] }
 0x15c   :  { %v289_v43 = vpop.f32.mrf.mxu2  ;;  %v318_v44 = vpop.f32.mrf.mxu3 }
 0x15d   :  { %v290_v48 = vadd.f32 %v289_v43, %v1403_v29  ;;  %v319_v49 = vadd.f32 %v318_v44, %v1405_v30  ;;  %v497_v44 = vld [vmem:[#allocation11 + $0x178] sm:$0xff]  ;;  %553 = vmatpush.msrb.mxu1 %v492_v58 }
 0x15f   :  { %v1421_v59 = vmax.f32 %v290_v48, 0.0  ;;  %v1423_v60 = vmax.f32 %v319_v49, 0.0  ;;  %554 = vmatpush.msrb.mxu1 %v490_v4 }
 0x161   :  { %v356_v10 = vmul.f32 %v1421_v59, %v1421_v59  ;;  %v357_v11 = vmul.f32 %v1423_v60, %v1423_v60  ;;  %v333_v32 = vadd.f32 %v332_v9, %v1421_v59  ;;  %v342_v33 = vadd.f32 %v341_v17, %v1423_v60 }
 0x163   :  { %v361_v36 = vadd.f32 %v360_v25, %v356_v10  ;;  %v370_v37 = vadd.f32 %v369_v26, %v357_v11  ;;  %v491_v10 = vld [vmem:[#allocation11 + $0x148] sm:$0xff]  ;;  %v456_v11 = vld [vmem:[#allocation11 + $0x30] sm:$0xff] }
 0x164   :  { %v292_v12 = vpop.f32.mrf.mxu2  ;;  %v321_v13 = vpop.f32.mrf.mxu3  ;;  %v455_v25 = vld [vmem:[#allocation11 + $0x28] sm:$0xff] }
 0x165   :  { %v293_v18 = vadd.f32 %v292_v12, %v1403_v29  ;;  %v322_v19 = vadd.f32 %v321_v13, %v1405_v30  ;;  %v499_v29 = vld [vmem:[#allocation11 + $0x188] sm:$0xff]  ;;  %v464_v30 = vld [vmem:[#allocation11 + $0x70] sm:$0xff]  ;;  %v457_v13 = vld [vmem:[#allocation11 + $0x38] sm:$0xff] }
 0x166   :  { %608 = vmatpush.msrb.mxu3 %v499_v29  ;;  %522 = vmatpush.msrb.mxu0 %v464_v30  ;;  %v488_v12 = vld [vmem:[#allocation11 + $0x130] sm:$0xff]  ;;  %v453_v30 = vld [vmem:[#allocation11 + $0x18] sm:$0xff] }
 0x167   :  { %v1445_v34 = vmax.f32 %v293_v18, 0.0  ;;  %v1447_v35 = vmax.f32 %v322_v19, 0.0  ;;  %v489_v18 = vld [vmem:[#allocation11 + $0x138] sm:$0xff]  ;;  %v454_v19 = vld [vmem:[#allocation11 + $0x20] sm:$0xff]  ;;  %555 = vmatpush.msrb.mxu1 %v488_v12  ;;  %584 = vmatpush.msrb.mxu2 %v457_v13  ;;  %v484_v29 = vld [vmem:[#allocation11 + $0x110] sm:$0xff] }
 0x168   :  { %609 = vmatpush.msrb.mxu3 %v497_v44  ;;  %523 = vmatpush.msrb.mxu0 %v462_v45 }
 0x169   :  { %v334_v40 = vadd.f32 %v333_v32, %v1445_v34  ;;  %v358_v41 = vmul.f32 %v1445_v34, %v1445_v34  ;;  %v343_v42 = vadd.f32 %v342_v33, %v1447_v35  ;;  %v359_v43 = vmul.f32 %v1447_v35, %v1447_v35  ;;  %v487_v32 = vld [vmem:[#allocation11 + $0x128] sm:$0xff]  ;;  %v452_v33 = vld [vmem:[#allocation11 + $0x10] sm:$0xff]  ;;  %556 = vmatpush.msrb.mxu1 %v486_v24 }
 0x16a   :  { %610 = vmatpush.msrb.mxu3 %v495_v54  ;;  %524 = vmatpush.msrb.mxu0 %v460_v55 }
 0x16b   :  { %v335_v48 = vrot.slane %v334_v40, 4  ;;  %v362_v49 = vadd.f32 %v361_v36, %v358_v41  ;;  %v344_v50 = vrot.slane %v343_v42, 4  ;;  %v371_v53 = vadd.f32 %v370_v37, %v359_v43  ;;  %585 = vmatpush.msrb.mxu2 %v455_v25  ;;  %v450_v41 = vld [vmem:[#allocation11] sm:$0xff]  ;;  %v451_v43 = vld [vmem:[#allocation11 + $0x8] sm:$0xff]  ;;  %557 = vmatpush.msrb.mxu1 %v484_v29 }
 0x16c   :  { %611 = vmatpush.msrb.mxu3 %v493_v2  ;;  %525 = vmatpush.msrb.mxu0 %v458_v3 }
 0x16d   :  { %v336_v62 = vadd.f32 %v335_v48, %v334_v40  ;;  %v363_v63 = vrot.slane %v362_v49, 4  ;;  %v345_v0 = vadd.f32 %v344_v50, %v343_v42  ;;  %v372_v1 = vrot.slane %v371_v53, 4  ;;  %v485_v40 = vld [vmem:[#allocation11 + $0x118] sm:$0xff]  ;;  %v482_v42 = vld [vmem:[#allocation11 + $0x100] sm:$0xff]  ;;  %586 = vmatpush.msrb.mxu2 %v453_v30  ;;  %v483_v48 = vld [vmem:[#allocation11 + $0x108] sm:$0xff] }
 0x16e   :  { %612 = vmatpush.msrb.mxu3 %v491_v10  ;;  %526 = vmatpush.msrb.mxu0 %v456_v11  ;;  %v436_v11 = vld [vmem:[#allocation10] sm:$0x3] }
 0x16f   :  { %v337_v6 = vrot.slane %v336_v62, 2  ;;  %v364_v7 = vadd.f32 %v363_v63, %v362_v49  ;;  %v346_v8 = vrot.slane %v345_v0, 2  ;;  %v373_v9 = vadd.f32 %v372_v1, %v371_v53  ;;  %558 = vmatpush.msrb.mxu1 %v482_v42  ;;  %587 = vmatpush.msrb.mxu2 %v451_v43 }
 0x170   :  { %613 = vmatpush.msrb.mxu3 %v489_v18  ;;  %527 = vmatpush.msrb.mxu0 %v454_v19  ;;  %v438_v19 = vperm.slane %v436_v11, 0 }
 0x171   :  { %v338_v14 = vadd.f32 %v337_v6, %v336_v62  ;;  %v365_v15 = vrot.slane %v364_v7, 2  ;;  %v347_v16 = vadd.f32 %v346_v8, %v345_v0  ;;  %v374_v17 = vrot.slane %v373_v9, 2  ;;  %v422_v8 = vld [vmem:[%s1589_s4] sm:$0x3] }
 0x172   :  { %614 = vmatpush.msrb.mxu3 %v487_v32  ;;  %528 = vmatpush.msrb.mxu0 %v452_v33  ;;  %v424_v13 = vperm.slane %v422_v8, 0 }
 0x173   :  { %v339_v26 = vrot.slane %v338_v14, 1  ;;  %v366_v27 = vadd.f32 %v365_v15, %v364_v7  ;;  %v348_v28 = vrot.slane %v347_v16, 1  ;;  %v375_v31 = vadd.f32 %v374_v17, %v373_v9 }
 0x174   :  { %615 = vmatpush.msrb.mxu3 %v485_v40  ;;  %529 = vmatpush.msrb.mxu0 %v450_v41  ;;  %v425_v17 = vperm.slane %v422_v8, 1 }
 0x175   :  { %v340_v36 = vadd.f32 %v339_v26, %v338_v14  ;;  %v367_v37 = vrot.slane %v366_v27, 1  ;;  %v349_v38 = vadd.f32 %v348_v28, %v347_v16  ;;  %v376_v39 = vrot.slane %v375_v31, 1 }
 0x176   :  { %616 = vmatpush.msrb.mxu3 %v483_v48  ;;  %v439_v26 = vperm.slane %v436_v11, 1 }
 0x177   :  { %v1455_v44 = vmul.f32 0.03125, %v340_v36  ;;  %v368_v45 = vadd.f32 %v367_v37, %v366_v27  ;;  %v1457_v46 = vmul.f32 0.03125, %v349_v38  ;;  %v377_v47 = vadd.f32 %v376_v39, %v375_v31 }
 0x179   :  { %v378_v49 = vmul.f32 0.03125, %v368_v45  ;;  %v380_v50 = vmul.f32 %v1455_v44, %v1455_v44  ;;  %v379_v53 = vmul.f32 0.03125, %v377_v47  ;;  %v381_v54 = vmul.f32 %v1457_v46, %v1457_v46 }
 0x17a   :  { %v384_v12 = vsub.f32 %v1417_v56, %v1455_v44  ;;  %v385_v16 = vsub.f32 %v1419_v57, %v1457_v46  ;;  %v386_v28 = vsub.f32 %v1413_v51, %v1455_v44  ;;  %v387_v31 = vsub.f32 %v1415_v52, %v1457_v46 }
 0x17b   :  { %v382_v55 = vsub.f32 %v378_v49, %v380_v50  ;;  %v383_v58 = vsub.f32 %v379_v53, %v381_v54  ;;  %v388_v37 = vsub.f32 %v1421_v59, %v1455_v44  ;;  %v389_v51 = vsub.f32 %v1423_v60, %v1457_v46 }
 0x17c   :  { %v390_v43 = vsub.f32 %v1445_v34, %v1455_v44  ;;  %v391_v45 = vsub.f32 %v1447_v35, %v1457_v46 }
 0x17d   :  { %v392_v61 = vadd.f32 1e-05, %v382_v55  ;;  %v393_v62 = vadd.f32 1e-05, %v383_v58 }
 0x17f   :  { %1020 = vrsqrt.f32 %v392_v61  ;;  %vm400_vm3 = vweird.f32 %v392_v61  ;;  %vm410_vm5 = vweird.f32 %v393_v62 }
 0x180   :  { %1022 = vrsqrt.f32 %v393_v62 }
 0x185   :  { %v1021_v63 = vpop.eup %1020 }
 0x186   :  { %v1023_v0 = vpop.eup %1022  ;;  %v395_v1 = vmul.f32 %v1021_v63, %v392_v61  ;;  %vm401_vm1 = vweird.f32 %v1021_v63 }
 0x187   :  { %v405_v2 = vmul.f32 %v1023_v0, %v393_v62  ;;  %vm411_vm2 = vweird.f32 %v1023_v0  ;;  %vm402_vm4 = vmor %vm400_vm3, %vm401_vm1 }
 0x188   :  { %v396_v3 = vmul.f32 %v1021_v63, %v395_v1  ;;  %vm412_vm6 = vmor %vm410_vm5, %vm411_vm2 }
 0x189   :  { %v406_v4 = vmul.f32 %v1023_v0, %v405_v2 }
 0x18a   :  { %v397_v5 = vmul.f32 0.5, %v396_v3 }
 0x18b   :  { %v407_v6 = vmul.f32 0.5, %v406_v4 }
 0x18c   :  { %v398_v7 = vsub.f32 1.5, %v397_v5 }
 0x18d   :  { %v408_v9 = vsub.f32 1.5, %v407_v6 }
 0x18e   :  { %v399_v10 = vmul.f32 %v1021_v63, %v398_v7 }
 0x18f   :  { %v409_v14 = vmul.f32 %v1023_v0, %v408_v9 }
 0x190   :  { %v403_v15 = vsel %vm402_vm4, %v1021_v63, %v399_v10 }
 0x191   :  { %v414_v18 = vmul.f32 %v403_v15, %v384_v12  ;;  %v413_v24 = vsel %vm412_vm6, %v1023_v0, %v409_v14  ;;  %v416_v33 = vmul.f32 %v403_v15, %v386_v28  ;;  %v418_v39 = vmul.f32 %v403_v15, %v388_v37  ;;  %v832_v28 = vld [vmem:[#allocation14 + $0x60] sm:$0xff] }
 0x192   :  { %v415_v25 = vmul.f32 %v413_v24, %v385_v16  ;;  %v417_v30 = vmul.f32 %v413_v24, %v387_v31  ;;  %v419_v52 = vmul.f32 %v413_v24, %v389_v51  ;;  %v420_v47 = vmul.f32 %v403_v15, %v390_v43  ;;  %v1501_v15 = vld [vmem:[%s1592_s7] sm:$0x3]  ;;  %v829_v51 = vld [vmem:[#allocation14 + $0x48] sm:$0xff] }
 0x193   :  { %v428_v27 = vmul.f32 %v424_v13, %v414_v18  ;;  %v430_v57 = vmul.f32 %v424_v13, %v416_v33  ;;  %v432_v41 = vmul.f32 %v424_v13, %v418_v39  ;;  %v421_v60 = vmul.f32 %v413_v24, %v391_v45  ;;  %v831_v31 = vld [vmem:[#allocation14 + $0x58] sm:$0xff] }
 0x194   :  { %v429_v56 = vmul.f32 %v425_v17, %v415_v25  ;;  %v431_v36 = vmul.f32 %v425_v17, %v417_v30  ;;  %v433_v42 = vmul.f32 %v425_v17, %v419_v52  ;;  %v434_v49 = vmul.f32 %v424_v13, %v420_v47  ;;  %v828_v52 = vld [vmem:[#allocation14 + $0x40] sm:$0xff]  ;;  %v827_v45 = vld [vmem:[#allocation14 + $0x38] sm:$0xff] }
 0x195   :  { %v442_v32 = vadd.f32 %v438_v19, %v428_v27  ;;  %v444_v38 = vadd.f32 %v438_v19, %v430_v57  ;;  %v446_v59 = vadd.f32 %v438_v19, %v432_v41  ;;  %v435_v50 = vmul.f32 %v425_v17, %v421_v60 }
 0x196   :  { %v443_v29 = vadd.f32 %v439_v26, %v429_v56  ;;  %v445_v40 = vadd.f32 %v439_v26, %v431_v36  ;;  %v447_v48 = vadd.f32 %v439_v26, %v433_v42  ;;  %v448_v53 = vadd.f32 %v438_v19, %v434_v49  ;;  %v835_v19 = vld [vmem:[#allocation14 + $0x78] sm:$0xff] }
 0x197   :  { %530 = vmatmul.f32.vlgmr.msrb.gmra.mxu0 %v442_v32  ;;  %588 = vmatmul.f32.vlgmr.msrb.gmra.mxu2 %v442_v32  ;;  %v449_v54 = vadd.f32 %v439_v26, %v435_v50  ;;  %v632_v17 = vperm.slane %v1501_v15, 0  ;;  %v833_v26 = vld [vmem:[#allocation14 + $0x68] sm:$0xff] }
 0x198   :  { %559 = vmatmul.f32.vlgmr.msrb.gmra.mxu1 %v443_v29  ;;  %617 = vmatmul.f32.vlgmr.msrb.gmra.mxu3 %v443_v29  ;;  %v830_v29 = vld [vmem:[#allocation14 + $0x50] sm:$0xff] }
 0x199   :  { %852 = vmatpush.msra.mxu2 %v835_v19 }
 0x19f   :  { %533 = vmatmul.f32.gmra.mxu0 %v444_v38  ;;  %591 = vmatmul.f32.gmra.mxu2 %v444_v38 }
 0x1a0   :  { %562 = vmatmul.f32.gmra.mxu1 %v445_v40  ;;  %620 = vmatmul.f32.gmra.mxu3 %v445_v40 }
 0x1a7   :  { %536 = vmatmul.f32.gmra.mxu0 %v446_v59  ;;  %594 = vmatmul.f32.gmra.mxu2 %v446_v59 }
 0x1a8   :  { %565 = vmatmul.f32.gmra.mxu1 %v447_v48  ;;  %623 = vmatmul.f32.gmra.mxu3 %v447_v48  ;;  %v826_v48 = vld [vmem:[#allocation14 + $0x30] sm:$0xff] }
 0x1af   :  { %539 = vmatmul.f32.gmra.mxu0 %v448_v53  ;;  %597 = vmatmul.f32.gmra.mxu2 %v448_v53  ;;  %v825_v53 = vld [vmem:[#allocation14 + $0x28] sm:$0xff] }
 0x1b0   :  { %568 = vmatmul.f32.gmra.mxu1 %v449_v54  ;;  %626 = vmatmul.f32.gmra.mxu3 %v449_v54 }
 0x214   :  { %v531_v34 = vpop.f32.mrf.mxu0 }
 0x215   :  { %v560_v44 = vpop.f32.mrf.mxu1 }
 0x216   :  { %v561_v10 = vadd.f32 %v560_v44, %v531_v34  ;;  %v824_v44 = vld [vmem:[#allocation14 + $0x20] sm:$0xff] }
 0x21a   :  { %v589_v55 = vpop.f32.mrf.mxu2 }
 0x21b   :  { %v618_v35 = vpop.f32.mrf.mxu3 }
 0x21c   :  { %v534_v46 = vpop.f32.mrf.mxu0  ;;  %v619_v14 = vadd.f32 %v618_v35, %v589_v55 }
 0x21d   :  { %v563_v58 = vpop.f32.mrf.mxu1 }
 0x21e   :  { %v564_v7 = vadd.f32 %v563_v58, %v534_v46  ;;  %v823_v46 = vld [vmem:[#allocation14 + $0x18] sm:$0xff] }
 0x222   :  { %v592_v61 = vpop.f32.mrf.mxu2 }
 0x223   :  { %v621_v62 = vpop.f32.mrf.mxu3 }
 0x224   :  { %v537_v63 = vpop.f32.mrf.mxu0  ;;  %v622_v13 = vadd.f32 %v621_v62, %v592_v61  ;;  %v822_v62 = vld [vmem:[#allocation14 + $0x10] sm:$0xff] }
 0x225   :  { %v566_v0 = vpop.f32.mrf.mxu1 }
 0x226   :  { %v567_v6 = vadd.f32 %v566_v0, %v537_v63 }
 0x22a   :  { %v595_v1 = vpop.f32.mrf.mxu2 }
 0x22b   :  { %v624_v2 = vpop.f32.mrf.mxu3 }
 0x22c   :  { %v540_v3 = vpop.f32.mrf.mxu0  ;;  %v625_v12 = vadd.f32 %v624_v2, %v595_v1  ;;  %v821_v2 = vld [vmem:[#allocation14 + $0x8] sm:$0xff] }
 0x22d   :  { %v569_v4 = vpop.f32.mrf.mxu1 }
 0x22e   :  { %v570_v5 = vadd.f32 %v569_v4, %v540_v3 }
 0x230   :  { %648 = vmatpush.msra.mxu0 %v570_v5  ;;  %1002 = vmatpush.msra.mxu1 %v570_v5  ;;  %v820_v5 = vld [vmem:[#allocation14] sm:$0xff] }
 0x232   :  { %649 = vmatpush.msra.mxu0 %v567_v6  ;;  %1003 = vmatpush.msra.mxu1 %v567_v6  ;;  %v598_v8 = vpop.f32.mrf.mxu2 }
 0x233   :  { %v627_v9 = vpop.f32.mrf.mxu3 }
 0x234   :  { %v628_v11 = vadd.f32 %v627_v9, %v598_v8  ;;  %650 = vmatpush.msra.mxu0 %v564_v7  ;;  %1004 = vmatpush.msra.mxu1 %v564_v7  ;;  %v633_v8 = vperm.slane %v1501_v15, 1  ;;  %v851_v9 = vld [vmem:[#allocation14 + $0xf8] sm:$0xff] }
 0x235   :  { %881 = vmatpush.msra.mxu3 %v851_v9 }
 0x236   :  { %651 = vmatpush.msra.mxu0 %v561_v10  ;;  %1005 = vmatpush.msra.mxu1 %v561_v10 }
 0x237   :  { %991 = vmatmul.msk.f32.vlgmr.msra.gmra.mxu1 %vm177_vm0, %v1385_v21  ;;  %990 = vmatmul.msk.f32.vlgmr.msra.gmra.mxu0 %vm177_vm0, %v1379_v20 }
 0x238   :  { %677 = vmatpush.msrb.mxu1 %v628_v11 }
 0x23a   :  { %678 = vmatpush.msrb.mxu1 %v625_v12  ;;  %v850_v12 = vld [vmem:[#allocation14 + $0xf0] sm:$0xff] }
 0x23b   :  { %882 = vmatpush.msra.mxu3 %v850_v12 }
 0x23c   :  { %679 = vmatpush.msrb.mxu1 %v622_v13 }
 0x23e   :  { %680 = vmatpush.msrb.mxu1 %v619_v14 }
 0x23f   :  { %992 = vmatmul.msk.f32.gmra.mxu1 %vm177_vm0, %v1391_v22 }
 0x247   :  { %993 = vmatmul.msk.f32.gmra.mxu1 %vm177_vm0, %v1397_v23 }
 0x24f   :  { %994 = vmatmul.msk.f32.vlgmr.msrb.gmra.mxu1 %vm177_vm0, %v1379_v20 }
 0x257   :  { %995 = vmatmul.msk.f32.gmra.mxu1 %vm177_vm0, %v1385_v21  ;;  %v834_v21 = vld [vmem:[#allocation14 + $0x70] sm:$0xff] }
 0x258   :  { %853 = vmatpush.msra.mxu2 %v834_v21  ;;  %v847_v21 = vld [vmem:[#allocation14 + $0xd8] sm:$0xff] }
 0x25a   :  { %854 = vmatpush.msra.mxu2 %v833_v26 }
 0x25c   :  { %855 = vmatpush.msra.mxu2 %v832_v28 }
 0x25e   :  { %856 = vmatpush.msra.mxu2 %v831_v31 }
 0x25f   :  { %996 = vmatmul.msk.f32.gmra.mxu1 %vm177_vm0, %v1391_v22 }
 0x260   :  { %857 = vmatpush.msra.mxu2 %v830_v29 }
 0x262   :  { %858 = vmatpush.msra.mxu2 %v829_v51 }
 0x264   :  { %859 = vmatpush.msra.mxu2 %v828_v52 }
 0x266   :  { %860 = vmatpush.msra.mxu2 %v827_v45  ;;  %v842_v45 = vld [vmem:[#allocation14 + $0xb0] sm:$0xff] }
 0x267   :  { %997 = vmatmul.msk.f32.gmra.mxu1 %vm177_vm0, %v1397_v23 }
 0x268   :  { %861 = vmatpush.msra.mxu2 %v826_v48 }
 0x26a   :  { %862 = vmatpush.msra.mxu2 %v825_v53 }
 0x26c   :  { %863 = vmatpush.msra.mxu2 %v824_v44 }
 0x26e   :  { %864 = vmatpush.msra.mxu2 %v823_v46 }
 0x270   :  { %865 = vmatpush.msra.mxu2 %v822_v62  ;;  %v839_v62 = vld [vmem:[#allocation14 + $0x98] sm:$0xff] }
 0x272   :  { %866 = vmatpush.msra.mxu2 %v821_v2 }
 0x274   :  { %867 = vmatpush.msra.mxu2 %v820_v5  ;;  %v838_v5 = vld [vmem:[#allocation14 + $0x90] sm:$0xff] }
 0x2b4   :  { %v656_v16 = vpop.f32.mrf.mxu1  ;;  %v653_v18 = vpop.f32.mrf.mxu0 }
 0x2b5   :  { %v657_v20 = vadd.f32 %v656_v16, %v632_v17  ;;  %v654_v24 = vadd.f32 %v653_v18, %v632_v17  ;;  %v849_v18 = vld [vmem:[#allocation14 + $0xe8] sm:$0xff] }
 0x2b6   :  { %883 = vmatpush.msra.mxu3 %v849_v18 }
 0x2b7   :  { %v1504_v23 = vmax.f32 %v657_v20, 0.0  ;;  %v1506_v27 = vmax.f32 %v654_v24, 0.0  ;;  %v848_v20 = vld [vmem:[#allocation14 + $0xe0] sm:$0xff] }
 0x2b8   :  { %884 = vmatpush.msra.mxu3 %v848_v20 }
 0x2b9   :  { %v724_v32 = vmul.f32 %v1504_v23, %v1504_v23  ;;  %v722_v33 = vmul.f32 %v1506_v27, %v1506_v27  ;;  %v702_v36 = vadd.f32 %v1504_v23, %v1506_v27 }
 0x2ba   :  { %885 = vmatpush.msra.mxu3 %v847_v21 }
 0x2bb   :  { %v730_v38 = vadd.f32 %v724_v32, %v722_v33 }
 0x2bc   :  { %v659_v25 = vpop.f32.mrf.mxu1 }
 0x2bd   :  { %v660_v22 = vadd.f32 %v659_v25, %v632_v17 }
 0x2bf   :  { %v1508_v56 = vmax.f32 %v660_v22, 0.0  ;;  %v846_v22 = vld [vmem:[#allocation14 + $0xd0] sm:$0xff] }
 0x2c0   :  { %886 = vmatpush.msra.mxu3 %v846_v22 }
 0x2c1   :  { %v726_v57 = vmul.f32 %v1508_v56, %v1508_v56  ;;  %v703_v40 = vadd.f32 %v702_v36, %v1508_v56  ;;  %v844_v36 = vld [vmem:[#allocation14 + $0xc0] sm:$0xff] }
 0x2c3   :  { %v731_v43 = vadd.f32 %v730_v38, %v726_v57 }
 0x2c4   :  { %v662_v30 = vpop.f32.mrf.mxu1 }
 0x2c5   :  { %v663_v37 = vadd.f32 %v662_v30, %v632_v17  ;;  %v845_v30 = vld [vmem:[#allocation14 + $0xc8] sm:$0xff] }
 0x2c6   :  { %887 = vmatpush.msra.mxu3 %v845_v30 }
 0x2c7   :  { %v1518_v39 = vmax.f32 %v663_v37, 0.0 }
 0x2c8   :  { %888 = vmatpush.msra.mxu3 %v844_v36 }
 0x2c9   :  { %v704_v41 = vadd.f32 %v703_v40, %v1518_v39  ;;  %v728_v42 = vmul.f32 %v1518_v39, %v1518_v39  ;;  %v843_v40 = vld [vmem:[#allocation14 + $0xb8] sm:$0xff] }
 0x2ca   :  { %889 = vmatpush.msra.mxu3 %v843_v40 }
 0x2cb   :  { %v705_v59 = vrot.slane %v704_v41, 4  ;;  %v732_v47 = vadd.f32 %v731_v43, %v728_v42 }
 0x2cc   :  { %v682_v60 = vpop.f32.mrf.mxu1  ;;  %890 = vmatpush.msra.mxu3 %v842_v45 }
 0x2cd   :  { %v706_v49 = vadd.f32 %v705_v59, %v704_v41  ;;  %v733_v50 = vrot.slane %v732_v47, 4  ;;  %v683_v16 = vadd.f32 %v682_v60, %v633_v8  ;;  %v841_v60 = vld [vmem:[#allocation14 + $0xa8] sm:$0xff] }
 0x2ce   :  { %891 = vmatpush.msra.mxu3 %v841_v60 }
 0x2cf   :  { %v707_v54 = vrot.slane %v706_v49, 2  ;;  %v734_v34 = vadd.f32 %v733_v50, %v732_v47  ;;  %v1531_v24 = vmax.f32 %v683_v16, 0.0  ;;  %v1552_v50 = vld [vmem:[%s1593_s8] sm:$0x3] }
 0x2d1   :  { %v708_v55 = vadd.f32 %v707_v54, %v706_v49  ;;  %v735_v35 = vrot.slane %v734_v34, 2  ;;  %v723_v31 = vmul.f32 %v1531_v24, %v1531_v24 }
 0x2d3   :  { %v709_v58 = vrot.slane %v708_v55, 1  ;;  %v736_v61 = vadd.f32 %v735_v35, %v734_v34  ;;  %v840_v34 = vld [vmem:[#allocation14 + $0xa0] sm:$0xff] }
 0x2d4   :  { %v685_v63 = vpop.f32.mrf.mxu1  ;;  %892 = vmatpush.msra.mxu3 %v840_v34 }
 0x2d5   :  { %v710_v0 = vadd.f32 %v709_v58, %v708_v55  ;;  %v737_v1 = vrot.slane %v736_v61, 1  ;;  %v686_v11 = vadd.f32 %v685_v63, %v633_v8  ;;  %v1554_v55 = vld [vmem:[#allocation13] sm:$0x3] }
 0x2d6   :  { %893 = vmatpush.msra.mxu3 %v839_v62 }
 0x2d7   :  { %v1524_v3 = vmul.f32 0.03125, %v710_v0  ;;  %v738_v4 = vadd.f32 %v737_v1, %v736_v61  ;;  %v1529_v19 = vmax.f32 %v686_v11, 0.0  ;;  %v794_v61 = vperm.slane %v1552_v50, 0 }
 0x2d8   :  { %894 = vmatpush.msra.mxu3 %v838_v5  ;;  %v1028_v5 = vld [vmem:[#allocation5] sm:$0xff] }
 0x2d9   :  { %v748_v6 = vmul.f32 0.03125, %v738_v4  ;;  %v750_v7 = vmul.f32 %v1524_v3, %v1524_v3  ;;  %v725_v25 = vmul.f32 %v1529_v19, %v1529_v19  ;;  %v711_v32 = vadd.f32 %v1529_v19, %v1531_v24 }
 0x2da   :  { %v754_v58 = vsub.f32 %v1506_v27, %v1524_v3  ;;  %v808_v4 = vperm.slane %v1554_v55, 0  ;;  %v756_v9 = vsub.f32 %v1504_v23, %v1524_v3  ;;  %v837_v27 = vld [vmem:[#allocation14 + $0x88] sm:$0xff]  ;;  %v758_v22 = vsub.f32 %v1508_v56, %v1524_v3 }
 0x2db   :  { %v752_v10 = vsub.f32 %v748_v6, %v750_v7  ;;  %v739_v37 = vadd.f32 %v725_v25, %v723_v31  ;;  %895 = vmatpush.msra.mxu3 %v837_v27 }
 0x2dc   :  { %v688_v13 = vpop.f32.mrf.mxu1 }
 0x2dd   :  { %v762_v14 = vadd.f32 1e-05, %v752_v10  ;;  %v689_v17 = vadd.f32 %v688_v13, %v633_v8 }
 0x2df   :  { %1024 = vrsqrt.f32 %v762_v14  ;;  %v1533_v15 = vmax.f32 %v689_v17, 0.0  ;;  %vm770_vm8 = vweird.f32 %v762_v14 }
 0x2e1   :  { %v727_v33 = vmul.f32 %v1533_v15, %v1533_v15  ;;  %v712_v51 = vadd.f32 %v711_v32, %v1533_v15  ;;  %v760_v32 = vsub.f32 %v1518_v39, %v1524_v3 }
 0x2e3   :  { %v740_v41 = vadd.f32 %v739_v37, %v727_v33 }
 0x2e4   :  { %v691_v26 = vpop.f32.mrf.mxu1 }
 0x2e5   :  { %v1025_v28 = vpop.eup %1024  ;;  %v692_v29 = vadd.f32 %v691_v26, %v633_v8 }
 0x2e6   :  { %v765_v57 = vmul.f32 %v1025_v28, %v762_v14  ;;  %vm771_vm7 = vweird.f32 %v1025_v28  ;;  %v836_v14 = vld [vmem:[#allocation14 + $0x80] sm:$0xff] }
 0x2e7   :  { %v1544_v38 = vmax.f32 %v692_v29, 0.0  ;;  %vm772_vm9 = vmor %vm770_vm8, %vm771_vm7  ;;  %896 = vmatpush.msra.mxu3 %v836_v14 }
 0x2e8   :  { %v766_v52 = vmul.f32 %v1025_v28, %v765_v57 }
 0x2e9   :  { %v713_v42 = vadd.f32 %v712_v51, %v1544_v38  ;;  %v729_v43 = vmul.f32 %v1544_v38, %v1544_v38 }
 0x2ea   :  { %v767_v59 = vmul.f32 0.5, %v766_v52 }
 0x2eb   :  { %v714_v47 = vrot.slane %v713_v42, 4  ;;  %v741_v48 = vadd.f32 %v740_v41, %v729_v43  ;;  %v809_v43 = vperm.slane %v1554_v55, 1 }
 0x2ec   :  { %v768_v49 = vsub.f32 1.5, %v767_v59 }
 0x2ed   :  { %v715_v53 = vadd.f32 %v714_v47, %v713_v42  ;;  %v742_v54 = vrot.slane %v741_v48, 4  ;;  %v795_v42 = vperm.slane %v1552_v50, 1 }
 0x2ee   :  { %v769_v44 = vmul.f32 %v1025_v28, %v768_v49 }
 0x2ef   :  { %v716_v35 = vrot.slane %v715_v53, 2  ;;  %v743_v46 = vadd.f32 %v742_v54, %v741_v48 }
 0x2f0   :  { %v773_v63 = vsel %vm772_vm9, %v1025_v28, %v769_v44 }
 0x2f1   :  { %v717_v0 = vadd.f32 %v716_v35, %v715_v53  ;;  %v744_v1 = vrot.slane %v743_v46, 2  ;;  %v784_v2 = vmul.f32 %v773_v63, %v754_v58  ;;  %v786_v13 = vmul.f32 %v773_v63, %v756_v9  ;;  %v1019_v9 = vld [vmem:[%s1596_s11] ss:$0 sm:$0xff] }
 0x2f2   :  { %v788_v28 = vmul.f32 %v773_v63, %v758_v22  ;;  %v790_v30 = vmul.f32 %v773_v63, %v760_v32 }
 0x2f3   :  { %v718_v6 = vrot.slane %v717_v0, 1  ;;  %v745_v7 = vadd.f32 %v744_v1, %v743_v46  ;;  %v798_v8 = vmul.f32 %v794_v61, %v784_v2  ;;  %v800_v21 = vmul.f32 %v794_v61, %v786_v13 }
 0x2f4   :  { %v802_v31 = vmul.f32 %v794_v61, %v788_v28  ;;  %v804_v37 = vmul.f32 %v794_v61, %v790_v30 }
 0x2f5   :  { %v719_v10 = vadd.f32 %v718_v6, %v717_v0  ;;  %v746_v11 = vrot.slane %v745_v7, 1  ;;  %v812_v12 = vadd.f32 %v808_v4, %v798_v8  ;;  %v814_v26 = vadd.f32 %v808_v4, %v800_v21  ;;  %v1029_v6 = vld [vmem:[#allocation5 + $0x8] sm:$0xff]  ;;  %v1031_v8 = vld [vmem:[#allocation5 + $0x18] sm:$0xff] }
 0x2f6   :  { %v816_v29 = vadd.f32 %v808_v4, %v802_v31  ;;  %v818_v56 = vadd.f32 %v808_v4, %v804_v37 }
 0x2f7   :  { %v721_v16 = vmul.f32 0.03125, %v719_v10  ;;  %v747_v17 = vadd.f32 %v746_v11, %v745_v7  ;;  %868 = vmatmul.f32.vlgmr.msra.gmra.mxu2 %v812_v12  ;;  %v1030_v7 = vld [vmem:[#allocation5 + $0x10] sm:$0xff] }
 0x2f9   :  { %v749_v18 = vmul.f32 0.03125, %v747_v17  ;;  %v751_v20 = vmul.f32 %v721_v16, %v721_v16  ;;  %v755_v41 = vsub.f32 %v1531_v24, %v721_v16  ;;  %v757_v59 = vsub.f32 %v1529_v19, %v721_v16 }
 0x2fa   :  { %v759_v49 = vsub.f32 %v1533_v15, %v721_v16  ;;  %v761_v34 = vsub.f32 %v1544_v38, %v721_v16 }
 0x2fb   :  { %v753_v25 = vsub.f32 %v749_v18, %v751_v20 }
 0x2fd   :  { %v763_v23 = vadd.f32 1e-05, %v753_v25 }
 0x2ff   :  { %1026 = vrsqrt.f32 %v763_v23  ;;  %871 = vmatmul.f32.gmra.mxu2 %v814_v26  ;;  %vm780_vm11 = vweird.f32 %v763_v23 }
 0x305   :  { %v1027_v33 = vpop.eup %1026 }
 0x306   :  { %v775_v57 = vmul.f32 %v1027_v33, %v763_v23  ;;  %vm781_vm10 = vweird.f32 %v1027_v33 }
 0x307   :  { %874 = vmatmul.f32.gmra.mxu2 %v816_v29  ;;  %vm782_vm12 = vmor %vm780_vm11, %vm781_vm10 }
 0x308   :  { %v776_v36 = vmul.f32 %v1027_v33, %v775_v57 }
 0x30a   :  { %v777_v51 = vmul.f32 0.5, %v776_v36 }
 0x30c   :  { %v778_v40 = vsub.f32 1.5, %v777_v51 }
 0x30e   :  { %v779_v52 = vmul.f32 %v1027_v33, %v778_v40 }
 0x30f   :  { %877 = vmatmul.f32.gmra.mxu2 %v818_v56 }
 0x310   :  { %v783_v39 = vsel %vm782_vm12, %v1027_v33, %v779_v52 }
 0x311   :  { %v785_v3 = vmul.f32 %v783_v39, %v755_v41  ;;  %v787_v48 = vmul.f32 %v783_v39, %v757_v59  ;;  %v789_v54 = vmul.f32 %v783_v39, %v759_v49  ;;  %v791_v44 = vmul.f32 %v783_v39, %v761_v34 }
 0x313   :  { %v799_v45 = vmul.f32 %v795_v42, %v785_v3  ;;  %v801_v60 = vmul.f32 %v795_v42, %v787_v48  ;;  %v803_v24 = vmul.f32 %v795_v42, %v789_v54  ;;  %v805_v35 = vmul.f32 %v795_v42, %v791_v44 }
 0x315   :  { %v813_v47 = vadd.f32 %v809_v43, %v799_v45  ;;  %v815_v53 = vadd.f32 %v809_v43, %v801_v60  ;;  %v817_v50 = vadd.f32 %v809_v43, %v803_v24  ;;  %v819_v55 = vadd.f32 %v809_v43, %v805_v35 }
 0x317   :  { %897 = vmatmul.f32.vlgmr.msra.gmra.mxu3 %v813_v47 }
 0x31f   :  { %900 = vmatmul.f32.gmra.mxu3 %v815_v53 }
 0x327   :  { %903 = vmatmul.f32.gmra.mxu3 %v817_v50 }
 0x32f   :  { %906 = vmatmul.f32.gmra.mxu3 %v819_v55 }
 0x37a   :  { %v869_v46 = vpop.f32.mrf.mxu2 }
 0x382   :  { %v872_v58 = vpop.f32.mrf.mxu2 }
 0x38a   :  { %v875_v62 = vpop.f32.mrf.mxu2 }
 0x392   :  { %v878_v0 = vpop.f32.mrf.mxu2 }
 0x39a   :  { %v898_v19 = vpop.f32.mrf.mxu3 }
 0x39b   :  { %v899_v38 = vadd.f32 %v898_v19, %v869_v46 }
 0x3a2   :  { %v901_v61 = vpop.f32.mrf.mxu3 }
 0x3a3   :  { %v902_v4 = vadd.f32 %v901_v61, %v872_v58 }
 0x3aa   :  { %v904_v63 = vpop.f32.mrf.mxu3 }
 0x3ab   :  { %v905_v2 = vadd.f32 %v904_v63, %v875_v62 }
 0x3b2   :  { %v907_v15 = vpop.f32.mrf.mxu3 }
 0x3b3   :  { %v908_v1 = vadd.f32 %v907_v15, %v878_v0 }
 0x3b5   :  { %926 = vmatpush.msrb.mxu0 %v908_v1 }
 0x3b7   :  { %927 = vmatpush.msrb.mxu0 %v905_v2 }
 0x3b9   :  { %928 = vmatpush.msrb.mxu0 %v902_v4 }
 0x3bb   :  { %929 = vmatpush.msrb.mxu0 %v899_v38 }
 0x3bc   :  { %998 = vmatmul.msk.f32.vlgmr.msrb.gmra.mxu0 %vm177_vm0, %v1028_v5 }
 0x3c4   :  { %999 = vmatmul.msk.f32.gmra.mxu0 %vm177_vm0, %v1029_v6 }
 0x3cc   :  { %1000 = vmatmul.msk.f32.gmra.mxu0 %vm177_vm0, %v1030_v7 }
 0x3d4   :  { %1001 = vmatmul.msk.f32.gmra.mxu0 %vm177_vm0, %v1031_v8 }
 0x439   :  { %v931_v27 = vpop.f32.mrf.mxu0 }
 0x43a   :  { %v932_v10 = vadd.f32 %v1019_v9, %v931_v27 }
 0x43c   :  { %v943_v11 = vmax.f32 %v932_v10, 0.0 }
 0x43e   :  { %947 = vst [vmem:[#allocation16] sm:$0xff] %v943_v11 }
 0x441   :  { %v934_v12 = vpop.f32.mrf.mxu0 }
 0x442   :  { %v935_v13 = vadd.f32 %v1019_v9, %v934_v12 }
 0x444   :  { %v944_v14 = vmax.f32 %v935_v13, 0.0 }
 0x446   :  { %948 = vst [vmem:[#allocation16 + $0x8] sm:$0xff] %v944_v14 }
 0x449   :  { %v937_v16 = vpop.f32.mrf.mxu0 }
 0x44a   :  { %v938_v17 = vadd.f32 %v1019_v9, %v937_v16 }
 0x44c   :  { %v945_v18 = vmax.f32 %v938_v17, 0.0 }
 0x44e   :  { %949 = vst [vmem:[#allocation16 + $0x10] sm:$0xff] %v945_v18 }
 0x451   :  { %v940_v20 = vpop.f32.mrf.mxu0 }
 0x452   :  { %v941_v21 = vadd.f32 %v1019_v9, %v940_v20 }
 0x454   :  { %v946_v25 = vmax.f32 %v941_v21, 0.0 }
 0x456   :  { %950 = vst [vmem:[#allocation16 + $0x18] sm:$0xff] %v946_v25 }
 0x457   :  { %963 = dma.vmem_to_hbm [thread:$0]  %s956_s27, 512, %s958_s0, [#allocation4], %s1261_s29, %s1261_s29, %s1262_s30  }
 0x458   :  { %1258 = dma.done.wait [#allocation4], 512  }
 0x459   :  { %1259 = vsyncadd [#allocation4], 4294966784 }
 0x45a   :  { %968 = vsyncpa [#allocation3], 1 }
 0x45b   :  { %969 = vsyncpa [#allocation6], 1 }
 0x45c   :  { %970 = vsyncpa [#allocation9], 1 }
 0x45d   :  { %971 = vsyncpa [#allocation12], 1 }
 0x45e   :  { %972 = vsyncpa [#allocation15], 1 }
 0x45f   :  { %973 = vsyncpa [#allocation4], 1 }

</bundles_post_ra>
